<compile_context>
chip_gen: v7x
topology: tpu7x:2x2x1
jax: 0.10.0
libtpu: 0.0.40
codegen_flags: <defaults>
</compile_context>

<pallas_src>
import jax
import jax.numpy as jnp
from jax.experimental import pallas as pl
from jax.experimental.pallas import tpu as pltpu


def _patch_embed_kernel(x_ref, w_ref, b_ref, o_ref):
    # x_ref: (TM, K_pad) bf16 patches, w_ref: (K_pad, E_pad) bf16,
    # b_ref: (1, E_pad) f32, o_ref: (TM, E_pad).
    # Single un-tiled K contraction -> no accumulator scratch; f32 accumulate.
    acc = jnp.dot(x_ref[...], w_ref[...], preferred_element_type=jnp.float32)
    o_ref[...] = (acc + b_ref[...]).astype(o_ref.dtype)


def _round_up(x: int, m: int) -> int:
    return (x + m - 1) // m * m


def _choose_tm(M: int) -> int:
    """MXU-aligned M-tile; the cdiv grid handles a ragged last block.

    - Small problems: one full-M block (a block dim equal to the array dim is
      always layout-legal).
    - Otherwise: 256-aligned (matches the 2x256x256 MXU on v6e/v7x), capped at
      1024 to amortize the ~0.35us per-grid-step overhead, and <= M/2 so the
      grid has length >= 2 (double-buffering depth + both TCs on v7x).
    """
    if M <= 256:
        return M
    if M <= 512:
        return 256
    tm = (M // 2 // 256) * 256
    return max(256, min(1024, tm))


def prepare_patch_weights(weight, bias, lane: int = 128):
    """One-time weight prep (do this OUTSIDE the per-step hot path).

    Conv2d weight (E, C, P, P) -> (K_pad, E_pad) bf16 with K ordered
    (c, kh, kw) so that out = patches @ w_mat + bias matches nn.Conv2d, then
    zero-padded so K_pad, E_pad are multiples of 128 (lane-dense stores,
    aligned MXU K/N).  Bias -> (1, E_pad) f32.
    """
    E, C, P, _ = weight.shape
    K = C * P * P
    K_pad, E_pad = _round_up(K, lane), _round_up(E, lane)
    w_mat = weight.reshape(E, K).T.astype(jnp.bfloat16)       # (K, E)
    w_mat = jnp.pad(w_mat, ((0, K_pad - K), (0, E_pad - E)))
    b_mat = bias.astype(jnp.float32).reshape(1, E)
    b_mat = jnp.pad(b_mat, ((0, 0), (0, E_pad - E)))
    return w_mat, b_mat


def patch_embedding(x, w_mat, b_mat, patch_size, emb_size, out_dtype=None):
    """Forward pass of PatchEmbedding.

    Args:
      x:         (B, C, H, W), NCHW (PyTorch layout).
      w_mat:     (K_pad, E_pad) bf16 from prepare_patch_weights.
      b_mat:     (1, E_pad) f32 from prepare_patch_weights.
      patch_size: int P (H, W divisible by P).
      emb_size:  true embedding size E (<= E_pad).
      out_dtype: output dtype; default x.dtype (use jnp.bfloat16 to halve
                 output writeback when the downstream stack consumes bf16).

    Returns:
      (B, N, E) with N = (H // P) * (W // P).
    """
    B, C, H, W = x.shape
    P = patch_size
    E = emb_size
    K = C * P * P
    K_pad, E_pad = w_mat.shape
    assert H % P == 0 and W % P == 0
    assert K_pad >= K and E_pad >= E
    Hp, Wp = H // P, W // P
    N = Hp * Wp
    M = B * N
    out_dtype = x.dtype if out_dtype is None else out_dtype

    # Patch-extraction glue: (B,C,H,W) -> (M, K_pad), K ordered (c, kh, kw),
    # cast to bf16 for the MXU, zero-padded K columns contribute 0 to the GEMM.
    # allow_input_fusion on this operand lets XLA fuse transpose+cast+pad into
    # the pallas_call input when profitable (see TODO at top of file).
    patches = x.reshape(B, C, Hp, P, Wp, P)
    patches = patches.transpose(0, 2, 4, 1, 3, 5)
    patches = patches.reshape(M, K).astype(w_mat.dtype)
    if K_pad != K:
        patches = jnp.pad(patches, ((0, 0), (0, K_pad - K)))

    TM = _choose_tm(M)
    grid = (pl.cdiv(M, TM),)

    out = pl.pallas_call(
        _patch_embed_kernel,
        out_shape=jax.ShapeDtypeStruct((M, E_pad), out_dtype),
        grid=grid,
        in_specs=[
            # Patches: tiled over M, double-buffered by the Pallas pipeline.
            pl.BlockSpec((TM, K_pad), lambda i: (i, 0)),
            # Weight/bias: constant block index -> loaded once, VMEM-resident.
            pl.BlockSpec((K_pad, E_pad), lambda i: (0, 0)),
            pl.BlockSpec((1, E_pad), lambda i: (0, 0)),
        ],
        out_specs=pl.BlockSpec((TM, E_pad), lambda i: (i, 0)),
        compiler_params=pltpu.CompilerParams(
            # M-tiles are independent -> shard across both TCs on v7x.
            dimension_semantics=("parallel",),
            # Let XLA fuse the patch rearrange/cast/pad into operand 0 only.
            allow_input_fusion=[True, False, False],
            # At TM=1024, K=E=1024+: ~20 MiB including double buffers; 48 MiB
            # stays above the 16/32 MiB scoped defaults and under v7x's 64 MiB.
            vmem_limit_bytes=48 * 1024 * 1024,
        ),
    )(patches, w_mat, b_mat)

    if E_pad != E:
        out = out[:, :E]
    return out.reshape(B, N, E)


if __name__ == "__main__":
    # Small, deterministic setup consistent with the module:
    # in_channels=4, patch_size=4, emb_size=32, image 16x16, batch 2.
    B, C, H, W = 2, 4, 16, 16
    P = 4
    E = 32

    key = jax.random.PRNGKey(0)
    kx, kw, kb = jax.random.split(key, 3)
    x = jax.random.normal(kx, (B, C, H, W), dtype=jnp.float32)
    weight = jax.random.normal(kw, (E, C, P, P), dtype=jnp.float32) * 0.02
    bias = jax.random.normal(kb, (E,), dtype=jnp.float32) * 0.02

    # One-time weight prep (outside the per-call hot path).
    w_mat, b_mat = prepare_patch_weights(weight, bias)

    fwd = jax.jit(patch_embedding, static_argnums=(3, 4))
    out = jax.block_until_ready(fwd(x, w_mat, b_mat, P, E))

    # Reference: nn.Conv2d semantics via lax conv on bf16-quantized operands
    # (the same quantization the kernel applies to its MXU inputs), f32 accum.
    xq = x.astype(jnp.bfloat16).astype(jnp.float32)
    wq = weight.astype(jnp.bfloat16).astype(jnp.float32)
    ref = jax.lax.conv_general_dilated(
        xq, wq, window_strides=(P, P), padding="VALID",
        dimension_numbers=("NCHW", "OIHW", "NCHW"),
        precision=jax.lax.Precision.HIGHEST,
    ) + bias.reshape(1, E, 1, 1)
    ref = ref.reshape(B, E, -1).transpose(0, 2, 1)  # flatten(2).transpose(1,2)

    assert out.shape == (B, (H // P) * (W // P), E)
    assert jnp.allclose(out, ref, atol=2e-3, rtol=2e-3)
    print("KERNEL_OK")
</pallas_src>

<mosaic_0001>
module attributes {stable_mosaic.version = 11 : i64} {
  func.func @_patch_embed_kernel(%arg0: i32, %arg1: memref<32x128xbf16, #tpu.memory_space<vmem>>, %arg2: memref<128x128xbf16, #tpu.memory_space<vmem>>, %arg3: memref<1x128xf32, #tpu.memory_space<vmem>>, %arg4: memref<32x128xf32, #tpu.memory_space<vmem>>) attributes {dimension_semantics = [#tpu.dimension_semantics<parallel>], iteration_bounds = array<i64: 1>, scalar_prefetch = 0 : i64, scratch_operands = 0 : i64, tpu.core_type = #tpu.core_type<tc>, window_params = [{transform_indices = @transform_0, window_bounds = array<i64: 32, 128>}, {pipeline_mode = #tpu.pipeline_mode<synchronous>, transform_indices = @transform_1, window_bounds = array<i64: 128, 128>}, {pipeline_mode = #tpu.pipeline_mode<synchronous>, transform_indices = @transform_2, window_bounds = array<i64: 1, 128>}, {transform_indices = @transform_3, window_bounds = array<i64: 32, 128>}]} {
    %c0 = arith.constant 0 : index
    %c0_0 = arith.constant 0 : index
    %0 = vector.load %arg1[%c0, %c0_0] : memref<32x128xbf16, #tpu.memory_space<vmem>>, vector<32x128xbf16>
    %c0_1 = arith.constant 0 : index
    %c0_2 = arith.constant 0 : index
    %1 = vector.load %arg2[%c0_1, %c0_2] : memref<128x128xbf16, #tpu.memory_space<vmem>>, vector<128x128xbf16>
    %cst = arith.constant dense<0.000000e+00> : vector<32x128xf32>
    %2 = tpu.matmul %0, %1, %cst {dimension_numbers = #tpu.dot_dimension_numbers<[1], [0], [0], [1], [0, 0, 1, 1], [], []>} : vector<32x128xbf16>, vector<128x128xbf16>, vector<32x128xf32> -> vector<32x128xf32>
    %c0_3 = arith.constant 0 : index
    %c0_4 = arith.constant 0 : index
    %3 = vector.load %arg3[%c0_3, %c0_4] : memref<1x128xf32, #tpu.memory_space<vmem>>, vector<1x128xf32>
    %4 = vector.broadcast %3 : vector<1x128xf32> to vector<32x128xf32>
    %5 = arith.addf %2, %4 : vector<32x128xf32>
    %c0_5 = arith.constant 0 : index
    %c0_6 = arith.constant 0 : index
    %6 = vector.load %arg4[%c0_5, %c0_6] : memref<32x128xf32, #tpu.memory_space<vmem>>, vector<32x128xf32>
    tpu.vector_store %arg4[%c0_5, %c0_6], %5 {strides = array<i32>} : memref<32x128xf32, #tpu.memory_space<vmem>>, vector<32x128xf32>,
    return
  }
  func.func @transform_0(%arg0: i32) -> (i32, i32) {
    %c0_i32 = arith.constant 0 : i32
    %c0_i32_0 = arith.constant 0 : i32
    return %arg0, %c0_i32 : i32, i32
  }
  func.func @transform_1(%arg0: i32) -> (i32, i32) {
    %c0_i32 = arith.constant 0 : i32
    %c0_i32_0 = arith.constant 0 : i32
    %c0_i32_1 = arith.constant 0 : i32
    return %c0_i32, %c0_i32_0 : i32, i32
  }
  func.func @transform_2(%arg0: i32) -> (i32, i32) {
    %c0_i32 = arith.constant 0 : i32
    %c0_i32_0 = arith.constant 0 : i32
    %c0_i32_1 = arith.constant 0 : i32
    return %c0_i32, %c0_i32_0 : i32, i32
  }
  func.func @transform_3(%arg0: i32) -> (i32, i32) {
    %c0_i32 = arith.constant 0 : i32
    %c0_i32_0 = arith.constant 0 : i32
    return %arg0, %c0_i32 : i32, i32
  }
}

</mosaic_0001>

<bundles_post_ra>
// kernel: patch_embedding.2
= control target key start
LH: loop header
LB: loop body
LE: loop exit
PB: predicated region body
PF: predicated region fallthrough
CT: control target
= control target key end

     0   :  { %s423_s0 = inlined_call_operand.vmem [shape: bf16[128,128], index: 0, kind: input, shape index: {}]   ;;  %s424_s1 = inlined_call_operand.vmem [shape: f32[1,128], index: 1, kind: input, shape index: {}]   ;;  %s425_s2 = inlined_call_operand.vmem [shape: bf16[32,64], index: 2, kind: input, shape index: {}]   ;;  %s426_s3 = inlined_call_operand.<no memory space> [shape: bf16[], index: 3, kind: input, shape index: {}]   ;;  %s427_s4 = inlined_call_operand.hbm [shape: f32[32,128], index: 4, kind: output, shape index: {}]  }
   0x1   :  { %v9_v0 = vstv %s426_s3 }
   0x2   :  { %v10_v1 = vunpack.i.l.bf16 %v9_v0 }
   0x3   :  { %v312_v2 = vld [vmem:[%s423_s0] sm:$0xff]   ;;  %v33_v3 = vlaneseq  ;;  %v313_v4 = vld [vmem:[%s423_s0 + $0x8] sm:$0xff]   ;;  %v314_v5 = vld [vmem:[%s423_s0 + $0x10] sm:$0xff]  }
   0x4   :  { %288 = vmatprep.subr.bf16.mxu0 %v312_v2  ;;  %v315_v7 = vld [vmem:[%s423_s0 + $0x18] sm:$0xff]   ;;  %v30_v8 = vld [vmem:[%s425_s2] sm:$0xff]   ;;  %v265_v9 = vld [vmem:[%s425_s2 + $0x8] sm:$0xff]  }
   0x5   :  { %289 = vmatpush3.bf16.msra.mxu0 %v312_v2  ;;  %v34_v6 = vand.u32 127, %v33_v3 }
   0x6   :  { %290 = vmatprep.subr.bf16.mxu0 %v313_v4 }
   0x7   :  { %vm36_vm0 = vcmp.lt.s32.totalorder %v34_v6, 64 }
   0x9   :  { %291 = vmatpush3.bf16.msra.mxu0 %v313_v4 }
   0xa   :  { %292 = vmatprep.subr.bf16.mxu0 %v314_v5 }
   0xb   :  { %14 = vsyncpa [#allocation8], 0  ;;  %v31_v10 = vunpack.c.l.bf16 %v30_v8  ;;  %v52_v11 = vunpack.c.h.bf16 %v30_v8  ;;  %v74_v12 = vunpack.c.l.bf16 %v265_v9  ;;  %v96_v13 = vunpack.c.h.bf16 %v265_v9  ;;  %v316_v18 = vld [vmem:[%s423_s0 + $0x20] sm:$0xff]   ;;  %v317_v24 = vld [vmem:[%s423_s0 + $0x28] sm:$0xff]   ;;  %s347_s11 = smov [#allocation7]  }
   0xc   :  { %v346_v19 = vmov 0.0   ;;  %v318_v25 = vld [vmem:[%s423_s0 + $0x30] sm:$0xff]   ;;  %v319_v27 = vld [vmem:[%s423_s0 + $0x38] sm:$0xff]   ;;  %v267_v29 = vld [vmem:[%s424_s1] ss:$0 sm:$0xff]  ;;  %s253_s12 = sshll.u32 %s347_s11, 4  ;;  %s254_s12 = int_to_ptr.vmem [resolvable:$true] %s253_s12 }
   0xd   :  { %293 = vmatpush3.bf16.msra.mxu0 %v314_v5  ;;  %v37_v14 = vsel %vm36_vm0, %v31_v10, %v10_v1  ;;  %v58_v15 = vsel %vm36_vm0, %v52_v11, %v10_v1  ;;  %v80_v16 = vsel %vm36_vm0, %v74_v12, %v10_v1  ;;  %v102_v17 = vsel %vm36_vm0, %v96_v13, %v10_v1  ;;  %s322_s0 = scalar_lea.vmem %s254_s12, 512  ;;  %p327_p1 = scmp.lt.s32.totalorder %s254_s12, %s254_s12 }
   0xe   :  { %294 = vmatprep.subr.bf16.mxu0 %v315_v7  ;;  %v38_v20 = vpack.c.bf16 %v346_v19, %v37_v14  ;;  %v60_v21 = vpack.c.bf16 %v346_v19, %v58_v15  ;;  %v82_v22 = vpack.c.bf16 %v346_v19, %v80_v16  ;;  %v104_v23 = vpack.c.bf16 %v346_v19, %v102_v17  ;;  %p323_p0 = scmp.ne.s32.totalorder %s254_s12, %s322_s0  ;;  %p328_p2 = scmp.lt.s32.totalorder %s322_s0, %s322_s0 }
  0x10   :  { %40 = vst [vmem:[#allocation9] sm:$0xf] %v38_v20  ;;  %62 = vst [vmem:[#allocation9 + $0x4] sm:$0xf] %v60_v21  ;;  %p329_p3 = por %p328_p2, %p327_p1 }
  0x11   :  { %84 = vst [vmem:[#allocation9 + $0x8] sm:$0xf] %v82_v22  ;;  %106 = vst [vmem:[#allocation9 + $0xc] sm:$0xf] %v104_v23  ;;  %295 = vmatpush3.bf16.msra.mxu0 %v315_v7 }
  0x12   :  { %296 = vmatprep.subr.bf16.mxu0 %v316_v18  ;;  %p330_p4 = pnand %p329_p3, %p323_p0 }
  0x15   :  { %297 = vmatpush3.bf16.msra.mxu0 %v316_v18 }
  0x16   :  { %298 = vmatprep.subr.bf16.mxu0 %v317_v24 }
  0x17   :  { %v320_v26 = vld [vmem:[#allocation9] sm:$0xff]  }
  0x18   :  { %304 = vmatprep.mubr.bf16.mxu0 %v320_v26  ;;  %v321_v28 = vld [vmem:[#allocation9 + $0x8] sm:$0xff]  }
  0x19   :  { %299 = vmatpush3.bf16.msra.mxu0 %v317_v24 }
  0x1a   :  { %300 = vmatprep.subr.bf16.mxu0 %v318_v25 }
  0x1d   :  { %301 = vmatpush3.bf16.msra.mxu0 %v318_v25 }
  0x1e   :  { %302 = vmatprep.subr.bf16.mxu0 %v319_v27 }
  0x21   :  { %303 = vmatpush3.bf16.msra.mxu0 %v319_v27 }
  0x24   :  { %305 = vmatmul.mubr.bf16.vlgmr.msra.gmra.mrb[0].mxu0 %v321_v28 }
  0xf7   :  { %v306_v30 = vpop.f32.mrb[0].mxu0 }
  0xf8   :  { %v238_v31 = vadd.f32 %v306_v30, %v267_v29  ;;  %v229_v32 = vpop.f32.mrb[1].mxu0 }
  0xf9   :  { %v230_v33 = vadd.f32 %v267_v29, %v229_v32  ;;  %v307_v34 = vpop.f32.mrb[2].mxu0 }
  0xfa   :  { %246 = vst [vmem:[#allocation7 + $0x10] sm:$0xff] %v238_v31  ;;  %v241_v35 = vadd.f32 %v307_v34, %v267_v29  ;;  %v232_v36 = vpop.f32.mrb[3].mxu0 }
  0xfb   :  { %244 = vst [vmem:[#allocation7] sm:$0xff] %v230_v33  ;;  %v233_v37 = vadd.f32 %v267_v29, %v232_v36 }
  0xfc   :  { %247 = vst [vmem:[#allocation7 + $0x18] sm:$0xff] %v241_v35 }
  0xfd   :  { %245 = vst [vmem:[#allocation7 + $0x8] sm:$0xff] %v233_v37 }
  0xfe   :  { %333 = shalt.err (!%p330_p4)
}
  0xff   :  { %s334_s14 = scalar_lea.hbm %s427_s4, 512 }
 0x100   :  { %p335_p5 = scmp.ne.s32.totalorder %s427_s4, %s334_s14  ;;  %p338_p6 = scmp.lt.u32.totalorder %s334_s14, %s427_s4 }
 0x102   :  { %p340_p7 = pnand %p338_p6, %p335_p5 }
 0x104   :  { %343 = shalt.err (!%p340_p7)
}
 0x105   :  { %s348_s19 = smov 128   ;;  %s349_s20 = smov 8  }
 0x106   :  { %259 = dma.vmem_to_hbm [thread:$0]  %s254_s12, 512, %s427_s4, [#allocation8], %s348_s19, %s348_s19, %s349_s20  }
 0x107   :  { %344 = dma.done.wait [#allocation8], 512  }
 0x108   :  { %345 = vsyncadd [#allocation8], 4294966784 }
 0x109   :  { %263 = vsyncpa [#allocation8], 1 }

</bundles_post_ra>
